<compile_context>
chip_gen: v5e
topology: v5e:2x2
jax: 0.10.0
libtpu: 0.0.40
codegen_flags: <defaults>
</compile_context>

<pallas_src>
import functools
import math
from typing import NamedTuple

import jax
import jax.numpy as jnp
from jax import lax
from jax.experimental import pallas as pl
from jax.experimental.pallas import tpu as pltpu


# x:(m,k) contracted with w:(n,k) on axis 1 of both -> (m,n); no transpose.
_CONTRACT = (((1,), (1,)), ((), ()))


def _round_up(n, m):
    return ((n + m - 1) // m) * m


def _pick_tile(dim, cap, align=128):
    """Tile (multiple of `align`, <= cap) minimizing padded size; ties -> larger."""
    padded_full = _round_up(dim, align)
    if padded_full <= cap:
        return padded_full
    best_tile, best_pad = align, _round_up(dim, align)
    t = 2 * align
    while t <= cap:
        padded = _round_up(dim, t)
        if padded < best_pad or (padded == best_pad and t > best_tile):
            best_tile, best_pad = t, padded
        t += align
    return best_tile


class NoisyLinearMeta(NamedTuple):
    in_dim: int
    out_dim: int
    K: int        # padded in_dim
    N: int        # padded out_dim
    tk: int
    tn: int
    mxu_dtype: type


# ----------------------------------- kernels -----------------------------------

def _noisy_linear_train_kernel(x_ref, wmu_ref, wsig_ref, ein_ref, eout_ref,
                               b_ref, o_ref, acc_mu, acc_sig):
    k = pl.program_id(2)
    x = x_ref[...]                         # (tm, tk), already in MXU dtype
    xe = x * ein_ref[...]                  # factorized noise, input side

    @pl.when(k == 0)
    def _():                               # first K partial: plain write
        acc_mu[...] = lax.dot_general(x, wmu_ref[...], _CONTRACT,
                                      preferred_element_type=jnp.float32)
        acc_sig[...] = lax.dot_general(xe, wsig_ref[...], _CONTRACT,
                                       preferred_element_type=jnp.float32)

    @pl.when(k > 0)
    def _():                               # accumulate directly into scratch
        acc_mu[...] += lax.dot_general(x, wmu_ref[...], _CONTRACT,
                                       preferred_element_type=jnp.float32)
        acc_sig[...] += lax.dot_general(xe, wsig_ref[...], _CONTRACT,
                                        preferred_element_type=jnp.float32)

    @pl.when(k == pl.num_programs(2) - 1)
    def _():                               # eps_out / bias applied once
        o_ref[...] = (acc_mu[...] + acc_sig[...] * eout_ref[...]
                      + b_ref[...]).astype(o_ref.dtype)


def _noisy_linear_eval_kernel(x_ref, wmu_ref, b_ref, o_ref, acc_mu):
    k = pl.program_id(2)

    @pl.when(k == 0)
    def _():
        acc_mu[...] = lax.dot_general(x_ref[...], wmu_ref[...], _CONTRACT,
                                      preferred_element_type=jnp.float32)

    @pl.when(k > 0)
    def _():
        acc_mu[...] += lax.dot_general(x_ref[...], wmu_ref[...], _CONTRACT,
                                       preferred_element_type=jnp.float32)

    @pl.when(k == pl.num_programs(2) - 1)
    def _():
        o_ref[...] = (acc_mu[...] + b_ref[...]).astype(o_ref.dtype)


# ------------------------------ prepare + forward ------------------------------

def prepare_noisy_linear(params, mxu_dtype=jnp.float32):
    """Pad + cast parameters/noise once (re-run after reset_noise() or a
    parameter update).  The per-forward path then only pads the activations,
    so weight padding/casting never hits HBM on the hot path."""
    out_dim, in_dim = params["weight_mu"].shape
    cap = 512 if jnp.dtype(mxu_dtype).itemsize >= 4 else 1024
    tn = _pick_tile(out_dim, cap)
    tk = _pick_tile(in_dim, cap)
    N = _round_up(out_dim, tn)
    K = _round_up(in_dim, tk)

    def pad2(a, r, c, dt):
        return jnp.pad(a.astype(dt), ((0, r - a.shape[0]), (0, c - a.shape[1])))

    def row(v, c, dt):
        return pad2(v.reshape(1, -1), 1, c, dt)

    # Tiny bias precombined once, outside the tiled path.
    b_train = params["bias_mu"] + params["bias_sigma"] * params["bias_epsilon"]

    arrays = dict(
        wmu=pad2(params["weight_mu"], N, K, mxu_dtype),
        wsig=pad2(params["weight_sigma"], N, K, mxu_dtype),
        ein=row(params["eps_in"], K, mxu_dtype),
        eout=row(params["eps_out"], N, jnp.float32),
        b_train=row(b_train, N, jnp.float32),
        b_eval=row(params["bias_mu"], N, jnp.float32),
    )
    meta = NoisyLinearMeta(in_dim=in_dim, out_dim=out_dim, K=K, N=N,
                           tk=tk, tn=tn, mxu_dtype=mxu_dtype)
    return arrays, meta


@functools.partial(jax.jit, static_argnames=("meta", "training"))
def noisy_linear(x, arrays, *, meta, training=True):
    """x: (batch, in_dim) -> (batch, out_dim)."""
    batch = x.shape[0]
    assert x.shape[1] == meta.in_dim
    # bf16 packs 16 rows per vreg sublane group; keep x vregs fully packed.
    sub = 8 if jnp.dtype(meta.mxu_dtype).itemsize >= 4 else 16
    tm = _pick_tile(batch, 256, align=sub)
    M = _round_up(batch, tm)

    x_p = jnp.pad(x.astype(meta.mxu_dtype),
                  ((0, M - batch), (0, meta.K - meta.in_dim)))

    tn, tk = meta.tn, meta.tk
    grid = (M // tm, meta.N // tn, meta.K // tk)

    x_spec = pl.BlockSpec((tm, tk), lambda i, j, k: (i, k))
    w_spec = pl.BlockSpec((tn, tk), lambda i, j, k: (j, k))
    nvec_spec = pl.BlockSpec((1, tn), lambda i, j, k: (0, j))
    kvec_spec = pl.BlockSpec((1, tk), lambda i, j, k: (0, k))
    o_spec = pl.BlockSpec((tm, tn), lambda i, j, k: (i, j))

    cp = pltpu.CompilerParams(
        dimension_semantics=("parallel", "parallel", "arbitrary"),
        vmem_limit_bytes=32 * 1024 * 1024)
    out_shape = jax.ShapeDtypeStruct((M, meta.N), x.dtype)

    if training:
        y = pl.pallas_call(
            _noisy_linear_train_kernel,
            out_shape=out_shape,
            grid_spec=pltpu.PrefetchScalarGridSpec(
                num_scalar_prefetch=0,
                grid=grid,
                in_specs=[x_spec, w_spec, w_spec, kvec_spec, nvec_spec,
                          nvec_spec],
                out_specs=o_spec,
                scratch_shapes=[pltpu.VMEM((tm, tn), jnp.float32),
                                pltpu.VMEM((tm, tn), jnp.float32)]),
            compiler_params=cp,
        )(x_p, arrays["wmu"], arrays["wsig"], arrays["ein"], arrays["eout"],
          arrays["b_train"])
    else:
        y = pl.pallas_call(
            _noisy_linear_eval_kernel,
            out_shape=out_shape,
            grid_spec=pltpu.PrefetchScalarGridSpec(
                num_scalar_prefetch=0,
                grid=grid,
                in_specs=[x_spec, w_spec, nvec_spec],
                out_specs=o_spec,
                scratch_shapes=[pltpu.VMEM((tm, tn), jnp.float32)]),
            compiler_params=cp,
        )(x_p, arrays["wmu"], arrays["b_eval"])

    return y[:batch, :meta.out_dim]


# -------------------- deterministic parameter / noise init --------------------

def _scale_noise(key, size):
    # torch: x = randn(size); x.sign() * x.abs().sqrt()
    x = jax.random.normal(key, (size,), dtype=jnp.float32)
    return jnp.sign(x) * jnp.sqrt(jnp.abs(x))


def init_noisy_linear(key, in_dim, out_dim, std_init=0.4):
    k_wmu, k_bmu, k_ein, k_eout, k_beps = jax.random.split(key, 5)
    mu_range = 1.0 / math.sqrt(in_dim)

    weight_mu = jax.random.uniform(
        k_wmu, (out_dim, in_dim), minval=-mu_range, maxval=mu_range,
        dtype=jnp.float32)
    weight_sigma = jnp.full((out_dim, in_dim),
                            std_init / math.sqrt(in_dim), dtype=jnp.float32)
    bias_mu = jax.random.uniform(
        k_bmu, (out_dim,), minval=-mu_range, maxval=mu_range,
        dtype=jnp.float32)
    bias_sigma = jnp.full((out_dim,),
                          std_init / math.sqrt(out_dim), dtype=jnp.float32)

    # reset_noise(): factorized Gaussian noise; the kernel consumes the
    # factors.  bias_epsilon is an independent draw, matching the spec module.
    eps_in = _scale_noise(k_ein, in_dim)       # (in_dim,)
    eps_out = _scale_noise(k_eout, out_dim)    # (out_dim,)
    bias_epsilon = _scale_noise(k_beps, out_dim)

    return dict(weight_mu=weight_mu, weight_sigma=weight_sigma,
                bias_mu=bias_mu, bias_sigma=bias_sigma,
                eps_in=eps_in, eps_out=eps_out,
                # Full outer-product epsilon kept only for the pure-JAX
                # reference check; the kernel never reads it.
                weight_epsilon=jnp.outer(eps_out, eps_in),
                bias_epsilon=bias_epsilon)


# ------------------------------------ main ------------------------------------

def _check(key, batch, in_dim, out_dim):
    k_p, k_x = jax.random.split(key)
    params = init_noisy_linear(k_p, in_dim, out_dim, std_init=0.4)
    x = jax.random.normal(k_x, (batch, in_dim), dtype=jnp.float32)

    arrays, meta = prepare_noisy_linear(params)            # f32 MXU feed
    y_train = jax.block_until_ready(
        noisy_linear(x, arrays, meta=meta, training=True))
    y_eval = jax.block_until_ready(
        noisy_linear(x, arrays, meta=meta, training=False))

    w_eff = params["weight_mu"] + params["weight_sigma"] * params["weight_epsilon"]
    b_eff = params["bias_mu"] + params["bias_sigma"] * params["bias_epsilon"]
    ref_train = x @ w_eff.T + b_eff
    ref_eval = x @ params["weight_mu"].T + params["bias_mu"]

    assert y_train.shape == (batch, out_dim)
    assert jnp.allclose(y_train, ref_train, atol=1e-4, rtol=1e-4)
    assert jnp.allclose(y_eval, ref_eval, atol=1e-4, rtol=1e-4)
    return params, x, ref_train


if __name__ == "__main__":
    key = jax.random.PRNGKey(0)
    k_small, k_big = jax.random.split(key)

    # Small shapes matching the NoisyDQN head usage (grid collapses to 1x1x1).
    params, x, ref_train = _check(k_small, batch=2, in_dim=32, out_dim=32)

    # bf16 MXU feed (weights pre-cast/padded at prepare time; f32 accumulate).
    arrays_bf16, meta_bf16 = prepare_noisy_linear(params, mxu_dtype=jnp.bfloat16)
    y_bf16 = jax.block_until_ready(
        noisy_linear(x, arrays_bf16, meta=meta_bf16, training=True))
    assert jnp.allclose(y_bf16, ref_train, atol=5e-2, rtol=5e-2)

    # Larger, ragged shapes to exercise padding + a multi-tile grid with the
    # K-axis accumulate path and several parallel j blocks.
    _check(k_big, batch=33, in_dim=1100, out_dim=530)

    print("KERNEL_OK")
</pallas_src>

<mosaic_0001>
module attributes {stable_mosaic.version = 11 : i64} {
  func.func @_noisy_linear_train_kernel(%arg0: i32, %arg1: i32, %arg2: i32, %arg3: memref<8x128xf32, #tpu.memory_space<vmem>>, %arg4: memref<128x128xf32, #tpu.memory_space<vmem>>, %arg5: memref<128x128xf32, #tpu.memory_space<vmem>>, %arg6: memref<1x128xf32, #tpu.memory_space<vmem>>, %arg7: memref<1x128xf32, #tpu.memory_space<vmem>>, %arg8: memref<1x128xf32, #tpu.memory_space<vmem>>, %arg9: memref<8x128xf32, #tpu.memory_space<vmem>>, %arg10: memref<8x128xf32, #tpu.memory_space<vmem>>, %arg11: memref<8x128xf32, #tpu.memory_space<vmem>>) attributes {dimension_semantics = [#tpu.dimension_semantics<parallel>, #tpu.dimension_semantics<parallel>, #tpu.dimension_semantics<arbitrary>], iteration_bounds = array<i64: 1, 1, 1>, scalar_prefetch = 0 : i64, scratch_operands = 2 : i64, tpu.core_type = #tpu.core_type<tc>, window_params = [{transform_indices = @transform_0, window_bounds = array<i64: 8, 128>}, {transform_indices = @transform_1, window_bounds = array<i64: 128, 128>}, {transform_indices = @transform_2, window_bounds = array<i64: 128, 128>}, {transform_indices = @transform_3, window_bounds = array<i64: 1, 128>}, {transform_indices = @transform_4, window_bounds = array<i64: 1, 128>}, {transform_indices = @transform_5, window_bounds = array<i64: 1, 128>}, {transform_indices = @transform_6, window_bounds = array<i64: 8, 128>}]} {
    %c0 = arith.constant 0 : index
    %c0_0 = arith.constant 0 : index
    %0 = vector.load %arg3[%c0, %c0_0] : memref<8x128xf32, #tpu.memory_space<vmem>>, vector<8x128xf32>
    %c0_1 = arith.constant 0 : index
    %c0_2 = arith.constant 0 : index
    %1 = vector.load %arg6[%c0_1, %c0_2] : memref<1x128xf32, #tpu.memory_space<vmem>>, vector<1x128xf32>
    %2 = vector.broadcast %1 : vector<1x128xf32> to vector<8x128xf32>
    %3 = arith.mulf %0, %2 : vector<8x128xf32>
    %c0_i32 = arith.constant 0 : i32
    %4 = arith.cmpi eq, %arg2, %c0_i32 : i32
    %5 = arith.extui %4 : i1 to i32
    %c0_i32_3 = arith.constant 0 : i32
    %6 = arith.cmpi ne, %5, %c0_i32_3 : i32
    scf.if %6 {
      %c0_8 = arith.constant 0 : index
      %c0_9 = arith.constant 0 : index
      %13 = vector.load %arg4[%c0_8, %c0_9] : memref<128x128xf32, #tpu.memory_space<vmem>>, vector<128x128xf32>
      %cst = arith.constant dense<0.000000e+00> : vector<8x128xf32>
      %14 = tpu.matmul %0, %13, %cst {dimension_numbers = #tpu.dot_dimension_numbers<[1], [1], [0], [0], [0, 0, 1, 0], [], []>} : vector<8x128xf32>, vector<128x128xf32>, vector<8x128xf32> -> vector<8x128xf32>
      %c0_10 = arith.constant 0 : index
      %c0_11 = arith.constant 0 : index
      %15 = vector.load %arg10[%c0_10, %c0_11] : memref<8x128xf32, #tpu.memory_space<vmem>>, vector<8x128xf32>
      tpu.vector_store %arg10[%c0_10, %c0_11], %14 {strides = array<i32>} : memref<8x128xf32, #tpu.memory_space<vmem>>, vector<8x128xf32>,
      %c0_12 = arith.constant 0 : index
      %c0_13 = arith.constant 0 : index
      %16 = vector.load %arg5[%c0_12, %c0_13] : memref<128x128xf32, #tpu.memory_space<vmem>>, vector<128x128xf32>
      %cst_14 = arith.constant dense<0.000000e+00> : vector<8x128xf32>
      %17 = tpu.matmul %3, %16, %cst_14 {dimension_numbers = #tpu.dot_dimension_numbers<[1], [1], [0], [0], [0, 0, 1, 0], [], []>} : vector<8x128xf32>, vector<128x128xf32>, vector<8x128xf32> -> vector<8x128xf32>
      %c0_15 = arith.constant 0 : index
      %c0_16 = arith.constant 0 : index
      %18 = vector.load %arg11[%c0_15, %c0_16] : memref<8x128xf32, #tpu.memory_space<vmem>>, vector<8x128xf32>
      tpu.vector_store %arg11[%c0_15, %c0_16], %17 {strides = array<i32>} : memref<8x128xf32, #tpu.memory_space<vmem>>, vector<8x128xf32>,
    } else {
    }
    %c0_i32_4 = arith.constant 0 : i32
    %7 = arith.cmpi sgt, %arg2, %c0_i32_4 : i32
    %8 = arith.extui %7 : i1 to i32
    %c0_i32_5 = arith.constant 0 : i32
    %9 = arith.cmpi ne, %8, %c0_i32_5 : i32
    scf.if %9 {
      %c0_8 = arith.constant 0 : index
      %c0_9 = arith.constant 0 : index
      %13 = vector.load %arg10[%c0_8, %c0_9] : memref<8x128xf32, #tpu.memory_space<vmem>>, vector<8x128xf32>
      %c0_10 = arith.constant 0 : index
      %c0_11 = arith.constant 0 : index
      %14 = vector.load %arg4[%c0_10, %c0_11] : memref<128x128xf32, #tpu.memory_space<vmem>>, vector<128x128xf32>
      %cst = arith.constant dense<0.000000e+00> : vector<8x128xf32>
      %15 = tpu.matmul %0, %14, %cst {dimension_numbers = #tpu.dot_dimension_numbers<[1], [1], [0], [0], [0, 0, 1, 0], [], []>} : vector<8x128xf32>, vector<128x128xf32>, vector<8x128xf32> -> vector<8x128xf32>
      %16 = arith.addf %13, %15 : vector<8x128xf32>
      %c0_12 = arith.constant 0 : index
      %c0_13 = arith.constant 0 : index
      %17 = vector.load %arg10[%c0_12, %c0_13] : memref<8x128xf32, #tpu.memory_space<vmem>>, vector<8x128xf32>
      tpu.vector_store %arg10[%c0_12, %c0_13], %16 {strides = array<i32>} : memref<8x128xf32, #tpu.memory_space<vmem>>, vector<8x128xf32>,
      %c0_14 = arith.constant 0 : index
      %c0_15 = arith.constant 0 : index
      %18 = vector.load %arg11[%c0_14, %c0_15] : memref<8x128xf32, #tpu.memory_space<vmem>>, vector<8x128xf32>
      %c0_16 = arith.constant 0 : index
      %c0_17 = arith.constant 0 : index
      %19 = vector.load %arg5[%c0_16, %c0_17] : memref<128x128xf32, #tpu.memory_space<vmem>>, vector<128x128xf32>
      %cst_18 = arith.constant dense<0.000000e+00> : vector<8x128xf32>
      %20 = tpu.matmul %3, %19, %cst_18 {dimension_numbers = #tpu.dot_dimension_numbers<[1], [1], [0], [0], [0, 0, 1, 0], [], []>} : vector<8x128xf32>, vector<128x128xf32>, vector<8x128xf32> -> vector<8x128xf32>
      %21 = arith.addf %18, %20 : vector<8x128xf32>
      %c0_19 = arith.constant 0 : index
      %c0_20 = arith.constant 0 : index
      %22 = vector.load %arg11[%c0_19, %c0_20] : memref<8x128xf32, #tpu.memory_space<vmem>>, vector<8x128xf32>
      tpu.vector_store %arg11[%c0_19, %c0_20], %21 {strides = array<i32>} : memref<8x128xf32, #tpu.memory_space<vmem>>, vector<8x128xf32>,
    } else {
    }
    %c0_i32_6 = arith.constant 0 : i32
    %10 = arith.cmpi eq, %arg2, %c0_i32_6 : i32
    %11 = arith.extui %10 : i1 to i32
    %c0_i32_7 = arith.constant 0 : i32
    %12 = arith.cmpi ne, %11, %c0_i32_7 : i32
    scf.if %12 {
      %c0_8 = arith.constant 0 : index
      %c0_9 = arith.constant 0 : index
      %13 = vector.load %arg10[%c0_8, %c0_9] : memref<8x128xf32, #tpu.memory_space<vmem>>, vector<8x128xf32>
      %c0_10 = arith.constant 0 : index
      %c0_11 = arith.constant 0 : index
      %14 = vector.load %arg11[%c0_10, %c0_11] : memref<8x128xf32, #tpu.memory_space<vmem>>, vector<8x128xf32>
      %c0_12 = arith.constant 0 : index
      %c0_13 = arith.constant 0 : index
      %15 = vector.load %arg7[%c0_12, %c0_13] : memref<1x128xf32, #tpu.memory_space<vmem>>, vector<1x128xf32>
      %16 = vector.broadcast %15 : vector<1x128xf32> to vector<8x128xf32>
      %17 = arith.mulf %14, %16 : vector<8x128xf32>
      %18 = arith.addf %13, %17 : vector<8x128xf32>
      %c0_14 = arith.constant 0 : index
      %c0_15 = arith.constant 0 : index
      %19 = vector.load %arg8[%c0_14, %c0_15] : memref<1x128xf32, #tpu.memory_space<vmem>>, vector<1x128xf32>
      %20 = vector.broadcast %19 : vector<1x128xf32> to vector<8x128xf32>
      %21 = arith.addf %18, %20 : vector<8x128xf32>
      %c0_16 = arith.constant 0 : index
      %c0_17 = arith.constant 0 : index
      %22 = vector.load %arg9[%c0_16, %c0_17] : memref<8x128xf32, #tpu.memory_space<vmem>>, vector<8x128xf32>
      tpu.vector_store %arg9[%c0_16, %c0_17], %21 {strides = array<i32>} : memref<8x128xf32, #tpu.memory_space<vmem>>, vector<8x128xf32>,
    } else {
    }
    return
  }
  func.func @transform_0(%arg0: i32, %arg1: i32, %arg2: i32) -> (i32, i32) {
    %c0_i32 = arith.constant 0 : i32
    return %arg0, %arg2 : i32, i32
  }
  func.func @transform_1(%arg0: i32, %arg1: i32, %arg2: i32) -> (i32, i32) {
    %c0_i32 = arith.constant 0 : i32
    return %arg1, %arg2 : i32, i32
  }
  func.func @transform_2(%arg0: i32, %arg1: i32, %arg2: i32) -> (i32, i32) {
    %c0_i32 = arith.constant 0 : i32
    return %arg1, %arg2 : i32, i32
  }
  func.func @transform_3(%arg0: i32, %arg1: i32, %arg2: i32) -> (i32, i32) {
    %c0_i32 = arith.constant 0 : i32
    %c0_i32_0 = arith.constant 0 : i32
    return %c0_i32, %arg2 : i32, i32
  }
  func.func @transform_4(%arg0: i32, %arg1: i32, %arg2: i32) -> (i32, i32) {
    %c0_i32 = arith.constant 0 : i32
    %c0_i32_0 = arith.constant 0 : i32
    return %c0_i32, %arg1 : i32, i32
  }
  func.func @transform_5(%arg0: i32, %arg1: i32, %arg2: i32) -> (i32, i32) {
    %c0_i32 = arith.constant 0 : i32
    %c0_i32_0 = arith.constant 0 : i32
    return %c0_i32, %arg1 : i32, i32
  }
  func.func @transform_6(%arg0: i32, %arg1: i32, %arg2: i32) -> (i32, i32) {
    %c0_i32 = arith.constant 0 : i32
    return %arg0, %arg1 : i32, i32
  }
}

</mosaic_0001>

<bundles_post_ra>
// kernel: noisy_linear.1
= control target key start
LH: loop header
LB: loop body
LE: loop exit
PB: predicated region body
PF: predicated region fallthrough
CT: control target
= control target key end

     0   :  { %11 = vsyncpa [#allocation5], 0  ;;  %s363_s0 = inlined_call_operand.vmem [shape: f32[8,128], index: 0, kind: input, shape index: {}]   ;;  %s364_s1 = inlined_call_operand.hbm [shape: f32[128,128], index: 1, kind: input, shape index: {}]   ;;  %s365_s2 = inlined_call_operand.hbm [shape: f32[128,128], index: 2, kind: input, shape index: {}]   ;;  %s366_s3 = inlined_call_operand.vmem [shape: f32[1,128], index: 3, kind: input, shape index: {}]   ;;  %s367_s4 = inlined_call_operand.vmem [shape: f32[1,128], index: 4, kind: input, shape index: {}]   ;;  %s368_s5 = inlined_call_operand.vmem [shape: f32[1,128], index: 5, kind: input, shape index: {}]   ;;  %s369_s6 = inlined_call_operand.vmem [shape: f32[8,128], index: 6, kind: output, shape index: {}]  }
   0x1   :  { %s19_s23 = sshll.u32 %s364_s1, 4  ;;  %s20_s23 = int_to_ptr.hbm [resolvable:$true] %s19_s23 }
   0x2   :  { %12 = vsyncpa [#allocation7], 0  ;;  %s303_s24 = smov [#allocation4]   ;;  %s32_s28 = sshll.u32 %s365_s2, 4  ;;  %s33_s28 = int_to_ptr.hbm [resolvable:$true] %s32_s28 }
   0x3   :  { %s21_s25 = sshll.u32 %s303_s24, 4  ;;  %s304_s29 = smov 128   ;;  %s22_s25 = int_to_ptr.vmem [resolvable:$true] %s21_s25 }
   0x4   :  { %s305_s30 = smov 8   ;;  %s306_s7 = smov [#allocation6]  }
   0x5   :  { %27 = dma.hbm_to_vmem [thread:$0]  %s20_s23, 2048, %s22_s25, [#allocation5], %s304_s29, %s304_s29, %s305_s30  }
   0x6   :  { %s34_s8 = sshll.u32 %s306_s7, 4  ;;  %s35_s8 = int_to_ptr.vmem [resolvable:$true] %s34_s8 }
   0x7   :  { %40 = dma.hbm_to_vmem [thread:$0]  %s33_s28, 2048, %s35_s8, [#allocation7], %s304_s29, %s304_s29, %s305_s30  }
   0x8   :  { %299 = dma.done.wait [#allocation5], 2048  }
   0x9   :  { %300 = vsyncadd [#allocation5], 4294965248 }
   0xa   :  { %301 = dma.done.wait [#allocation7], 2048  }
   0xb   :  { %302 = vsyncadd [#allocation7], 4294965248  ;;  %v117_v0 = vld [vmem:[#allocation6 + $0x78] sm:$0xff]  ;;  %v116_v2 = vld [vmem:[#allocation6 + $0x70] sm:$0xff] }
   0xc   :  { %v80_v1 = vld [vmem:[#allocation4 + $0x78] sm:$0xff]  ;;  %118 = vmatpush.xpose.msra.mxu1 %v117_v0  ;;  %v79_v3 = vld [vmem:[#allocation4 + $0x70] sm:$0xff]  ;;  %v115_v4 = vld [vmem:[#allocation6 + $0x68] sm:$0xff] }
   0xd   :  { %81 = vmatpush.xpose.msra.mxu0 %v80_v1  ;;  %v78_v5 = vld [vmem:[#allocation4 + $0x68] sm:$0xff]  ;;  %v114_v6 = vld [vmem:[#allocation6 + $0x60] sm:$0xff]  ;;  %v113_v8 = vld [vmem:[#allocation6 + $0x58] sm:$0xff] }
   0xe   :  { %v77_v7 = vld [vmem:[#allocation4 + $0x60] sm:$0xff]  ;;  %v76_v9 = vld [vmem:[#allocation4 + $0x58] sm:$0xff]  ;;  %v112_v10 = vld [vmem:[#allocation6 + $0x50] sm:$0xff] }
   0xf   :  { %v75_v11 = vld [vmem:[#allocation4 + $0x50] sm:$0xff]  ;;  %v111_v12 = vld [vmem:[#allocation6 + $0x48] sm:$0xff]  ;;  %v110_v14 = vld [vmem:[#allocation6 + $0x40] sm:$0xff] }
  0x10   :  { %119 = vmatpush.xpose.msra.mxu1 %v116_v2  ;;  %v74_v13 = vld [vmem:[#allocation4 + $0x48] sm:$0xff]  ;;  %v73_v15 = vld [vmem:[#allocation4 + $0x40] sm:$0xff]  ;;  %v109_v16 = vld [vmem:[#allocation6 + $0x38] sm:$0xff] }
  0x11   :  { %82 = vmatpush.xpose.msra.mxu0 %v79_v3  ;;  %v72_v17 = vld [vmem:[#allocation4 + $0x38] sm:$0xff]  ;;  %v108_v18 = vld [vmem:[#allocation6 + $0x30] sm:$0xff]  ;;  %v107_v20 = vld [vmem:[#allocation6 + $0x28] sm:$0xff] }
  0x12   :  { %v71_v19 = vld [vmem:[#allocation4 + $0x30] sm:$0xff]  ;;  %v70_v21 = vld [vmem:[#allocation4 + $0x28] sm:$0xff]  ;;  %v106_v22 = vld [vmem:[#allocation6 + $0x20] sm:$0xff] }
  0x13   :  { %v69_v23 = vld [vmem:[#allocation4 + $0x20] sm:$0xff]  ;;  %v105_v24 = vld [vmem:[#allocation6 + $0x18] sm:$0xff]  ;;  %v104_v26 = vld [vmem:[#allocation6 + $0x10] sm:$0xff] }
  0x14   :  { %120 = vmatpush.xpose.msra.mxu1 %v115_v4  ;;  %v68_v25 = vld [vmem:[#allocation4 + $0x18] sm:$0xff]  ;;  %v67_v27 = vld [vmem:[#allocation4 + $0x10] sm:$0xff]  ;;  %v103_v28 = vld [vmem:[#allocation6 + $0x8] sm:$0xff] }
  0x15   :  { %83 = vmatpush.xpose.msra.mxu0 %v78_v5  ;;  %v66_v29 = vld [vmem:[#allocation4 + $0x8] sm:$0xff]  ;;  %v248_v30 = vld [vmem:[%s366_s3] ss:$0 sm:$0xff] }
  0x16   :  { %v55_v31 = vld [vmem:[%s363_s0] sm:$0xff] }
  0x17   :  { %v102_v32 = vld [vmem:[#allocation6] sm:$0xff]  ;;  %v60_v34 = vmul.f32 %v248_v30, %v55_v31 }
  0x18   :  { %121 = vmatpush.xpose.msra.mxu1 %v114_v6  ;;  %v65_v33 = vld [vmem:[#allocation4] sm:$0xff] }
  0x19   :  { %84 = vmatpush.xpose.msra.mxu0 %v77_v7  ;;  %v249_v35 = vld [vmem:[%s367_s4] ss:$0 sm:$0xff] }
  0x1a   :  { %v250_v39 = vld [vmem:[%s368_s5] ss:$0 sm:$0xff] }
  0x1c   :  { %122 = vmatpush.xpose.msra.mxu1 %v113_v8 }
  0x1d   :  { %85 = vmatpush.xpose.msra.mxu0 %v76_v9 }
  0x20   :  { %123 = vmatpush.xpose.msra.mxu1 %v112_v10 }
  0x21   :  { %86 = vmatpush.xpose.msra.mxu0 %v75_v11 }
  0x24   :  { %124 = vmatpush.xpose.msra.mxu1 %v111_v12 }
  0x25   :  { %87 = vmatpush.xpose.msra.mxu0 %v74_v13 }
  0x28   :  { %125 = vmatpush.xpose.msra.mxu1 %v110_v14 }
  0x29   :  { %88 = vmatpush.xpose.msra.mxu0 %v73_v15 }
  0x2c   :  { %126 = vmatpush.xpose.msra.mxu1 %v109_v16 }
  0x2d   :  { %89 = vmatpush.xpose.msra.mxu0 %v72_v17 }
  0x30   :  { %127 = vmatpush.xpose.msra.mxu1 %v108_v18 }
  0x31   :  { %90 = vmatpush.xpose.msra.mxu0 %v71_v19 }
  0x34   :  { %128 = vmatpush.xpose.msra.mxu1 %v107_v20 }
  0x35   :  { %91 = vmatpush.xpose.msra.mxu0 %v70_v21 }
  0x38   :  { %129 = vmatpush.xpose.msra.mxu1 %v106_v22 }
  0x39   :  { %92 = vmatpush.xpose.msra.mxu0 %v69_v23 }
  0x3c   :  { %130 = vmatpush.xpose.msra.mxu1 %v105_v24 }
  0x3d   :  { %93 = vmatpush.xpose.msra.mxu0 %v68_v25 }
  0x40   :  { %131 = vmatpush.xpose.msra.mxu1 %v104_v26 }
  0x41   :  { %94 = vmatpush.xpose.msra.mxu0 %v67_v27 }
  0x44   :  { %132 = vmatpush.xpose.msra.mxu1 %v103_v28 }
  0x45   :  { %95 = vmatpush.xpose.msra.mxu0 %v66_v29 }
  0x48   :  { %133 = vmatpush.xpose.msra.mxu1 %v102_v32 }
  0x49   :  { %96 = vmatpush.xpose.msra.mxu0 %v65_v33 }
  0x4b   :  { %134 = vmatmul.f32.vlgmr.msra.gmra.mxu1 %v60_v34 }
  0x4c   :  { %97 = vmatmul.f32.vlgmr.msra.gmra.mxu0 %v55_v31 }
  0xc8   :  { %v135_v36 = vpop.f32.mrf.mxu1 }
  0xc9   :  { %v98_v37 = vpop.f32.mrf.mxu0  ;;  %v230_v38 = vmul.f32 %v249_v35, %v135_v36 }
  0xcb   :  { %v231_v40 = vadd.f32 %v230_v38, %v98_v37 }
  0xcd   :  { %v236_v41 = vadd.f32 %v250_v39, %v231_v40 }
  0xcf   :  { %237 = vst [vmem:[%s369_s6] sm:$0xff] %v236_v41 }
  0xd0   :  { %242 = vsyncpa [#allocation5], 1 }
  0xd1   :  { %243 = vsyncpa [#allocation7], 1 }

</bundles_post_ra>
